<compile_context>
chip_gen: v6e
topology: v6e:2x2x1
jax: 0.10.0
libtpu: 0.0.40
codegen_flags: <defaults>
</compile_context>

<pallas_src>
import jax
import jax.numpy as jnp
from jax.experimental import pallas as pl
from jax.experimental.pallas import tpu as pltpu


def patch_encoder_kernel(p_ref, w_ref, bias_ref, o_ref):
    # p_ref:    (TR, K)   padded patch rows (row 0 of each batch is zeros)
    # w_ref:    (K, E)    fused weight  Wc @ We
    # bias_ref: (TR, E)   per-row bias (cls+pos[0] on cls rows, b_fused+pos elsewhere)
    # o_ref:    (TR, E)
    o_ref[...] = (jnp.dot(p_ref[...], w_ref[...],
                          preferred_element_type=jnp.float32)
                  + bias_ref[...]).astype(o_ref.dtype)


def _pick_row_tile(rpad, max_tile=256):
    """Largest multiple-of-8 divisor of rpad that is <= min(max_tile, rpad//2).

    rpad is a multiple of 16, so rpad//2 is a multiple of 8 and the loop always
    finds a valid tile; preferring <= rpad//2 gives >=2 grid steps (megacore).
    """
    upper = min(max_tile, rpad // 2)
    for t in range(upper - (upper % 8), 7, -8):
        if rpad % t == 0:
            return t
    return rpad


def patch_encoder(x, conv_w, conv_b, enc_w, enc_b, cls_token, pos_embedding,
                  patch_size):
    """x: (B, C, H, W) float32 (NCHW, same as PyTorch)."""
    B, C, H, W = x.shape
    P = patch_size
    nH, nW = H // P, W // P
    N = nH * nW
    K = C * P * P                       # = patch_dim
    D = conv_w.shape[0]
    E = enc_w.shape[0]
    assert enc_w.shape[1] == D, "encoder in_features must equal conv out_channels"
    assert K == D, "PatchEncoder defines patch_dim == C*P*P == conv out_channels"

    # --- glue: extract non-overlapping patches in (C, P, P) order ---
    # (B, C, nH, P, nW, P) -> (B, nH, nW, C, P, P) -> (B, N, K)
    patches = x.reshape(B, C, nH, P, nW, P)
    patches = patches.transpose(0, 2, 4, 1, 3, 5).reshape(B, N, K)

    # --- algebraic fusion of conv(matmul) + Linear ---
    wc = conv_w.reshape(D, K).T                       # (K, D)
    we = enc_w.T                                      # (D, E)
    w_fused = wc @ we                                 # (K, E)
    b_fused = conv_b @ we + enc_b                     # (E,)

    pos = pos_embedding.reshape(N + 1, E)
    cls = cls_token.reshape(1, E)

    # Per-row bias matrix: row 0 is the cls token row (its patch row is zero),
    # rows 1..N carry the fused bias; positional embedding folded in too.
    bias_rows = jnp.concatenate(
        [cls + pos[0:1, :], b_fused[None, :] + pos[1:, :]], axis=0)   # (N+1, E)

    # Prepend a zero patch row per batch (cls slot), fold batch into rows.
    p_pad = jnp.concatenate(
        [jnp.zeros((B, 1, K), patches.dtype), patches], axis=1)       # (B, N+1, K)
    rows = B * (N + 1)
    p_flat = p_pad.reshape(rows, K)
    bias_flat = jnp.tile(bias_rows, (B, 1))                           # (rows, E)

    # Pad rows to a multiple of 16 so we can split into >=2 sublane-aligned tiles.
    ROW_ALIGN = 16
    rpad = ((rows + ROW_ALIGN - 1) // ROW_ALIGN) * ROW_ALIGN
    if rpad != rows:
        p_flat = jnp.pad(p_flat, ((0, rpad - rows), (0, 0)))
        bias_flat = jnp.pad(bias_flat, ((0, rpad - rows), (0, 0)))

    tr = _pick_row_tile(rpad)
    n_tiles = rpad // tr

    out_flat = pl.pallas_call(
        patch_encoder_kernel,
        out_shape=jax.ShapeDtypeStruct((rpad, E), jnp.float32),
        grid_spec=pltpu.PrefetchScalarGridSpec(
            num_scalar_prefetch=0,
            grid=(n_tiles,),
            in_specs=[
                pl.BlockSpec((tr, K), lambda i: (i, 0)),
                pl.BlockSpec((K, E), lambda i: (0, 0)),
                pl.BlockSpec((tr, E), lambda i: (i, 0)),
            ],
            out_specs=pl.BlockSpec((tr, E), lambda i: (i, 0)),
        ),
        compiler_params=pltpu.CompilerParams(
            dimension_semantics=("parallel",)),
    )(p_flat, w_fused, bias_flat)

    return out_flat[:rows].reshape(B, N + 1, E)


def reference(x, conv_w, conv_b, enc_w, enc_b, cls_token, pos_embedding,
              patch_size):
    B, C, H, W = x.shape
    P = patch_size
    nH, nW = H // P, W // P
    N = nH * nW
    D = conv_w.shape[0]
    patches = x.reshape(B, C, nH, P, nW, P).transpose(0, 2, 4, 1, 3, 5)
    patches = patches.reshape(B, N, C * P * P)
    h = patches @ conv_w.reshape(D, -1).T + conv_b
    z = h @ enc_w.T + enc_b
    cls = jnp.broadcast_to(cls_token, (B, 1, enc_w.shape[0]))
    z = jnp.concatenate([cls, z], axis=1)
    return z + pos_embedding


if __name__ == "__main__":
    # Module hyperparameters (small, consistent with the forward pass)
    image_size = 16
    in_channels = 4
    patch_size = 4
    embed_dim = 32
    patch_dim = in_channels * patch_size ** 2          # 64
    num_patches = (image_size // patch_size) ** 2      # 16
    B = 2

    key = jax.random.PRNGKey(0)
    ks = jax.random.split(key, 7)
    x = jax.random.normal(ks[0], (B, in_channels, image_size, image_size),
                          jnp.float32)
    conv_w = 0.05 * jax.random.normal(
        ks[1], (patch_dim, in_channels, patch_size, patch_size), jnp.float32)
    conv_b = 0.05 * jax.random.normal(ks[2], (patch_dim,), jnp.float32)
    enc_w = 0.05 * jax.random.normal(ks[3], (embed_dim, patch_dim), jnp.float32)
    enc_b = 0.05 * jax.random.normal(ks[4], (embed_dim,), jnp.float32)
    cls_token = jax.random.normal(ks[5], (1, 1, embed_dim), jnp.float32)
    pos_embedding = jax.random.normal(
        ks[6], (1, num_patches + 1, embed_dim), jnp.float32)

    out = patch_encoder(x, conv_w, conv_b, enc_w, enc_b, cls_token,
                        pos_embedding, patch_size)
    out = jax.block_until_ready(out)

    ref = reference(x, conv_w, conv_b, enc_w, enc_b, cls_token,
                    pos_embedding, patch_size)
    assert out.shape == (B, num_patches + 1, embed_dim)
    assert jnp.allclose(out, ref, atol=1e-4, rtol=1e-4)
    print("KERNEL_OK")
</pallas_src>

<mosaic_0001>
module attributes {stable_mosaic.version = 11 : i64} {
  func.func @patch_encoder_kernel(%arg0: i32, %arg1: memref<24x64xf32, #tpu.memory_space<vmem>>, %arg2: memref<64x32xf32, #tpu.memory_space<vmem>>, %arg3: memref<24x32xf32, #tpu.memory_space<vmem>>, %arg4: memref<24x32xf32, #tpu.memory_space<vmem>>) attributes {dimension_semantics = [#tpu.dimension_semantics<parallel>], iteration_bounds = array<i64: 2>, scalar_prefetch = 0 : i64, scratch_operands = 0 : i64, tpu.core_type = #tpu.core_type<tc>, window_params = [{transform_indices = @transform_0, window_bounds = array<i64: 24, 64>}, {pipeline_mode = #tpu.pipeline_mode<synchronous>, transform_indices = @transform_1, window_bounds = array<i64: 64, 32>}, {transform_indices = @transform_2, window_bounds = array<i64: 24, 32>}, {transform_indices = @transform_3, window_bounds = array<i64: 24, 32>}]} {
    %c0 = arith.constant 0 : index
    %c0_0 = arith.constant 0 : index
    %0 = vector.load %arg1[%c0, %c0_0] : memref<24x64xf32, #tpu.memory_space<vmem>>, vector<24x64xf32>
    %c0_1 = arith.constant 0 : index
    %c0_2 = arith.constant 0 : index
    %1 = vector.load %arg2[%c0_1, %c0_2] : memref<64x32xf32, #tpu.memory_space<vmem>>, vector<64x32xf32>
    %cst = arith.constant dense<0.000000e+00> : vector<24x32xf32>
    %2 = tpu.matmul %0, %1, %cst {dimension_numbers = #tpu.dot_dimension_numbers<[1], [0], [0], [1], [0, 0, 1, 1], [], []>} : vector<24x64xf32>, vector<64x32xf32>, vector<24x32xf32> -> vector<24x32xf32>
    %c0_3 = arith.constant 0 : index
    %c0_4 = arith.constant 0 : index
    %3 = vector.load %arg3[%c0_3, %c0_4] : memref<24x32xf32, #tpu.memory_space<vmem>>, vector<24x32xf32>
    %4 = arith.addf %2, %3 : vector<24x32xf32>
    %c0_5 = arith.constant 0 : index
    %c0_6 = arith.constant 0 : index
    %5 = vector.load %arg4[%c0_5, %c0_6] : memref<24x32xf32, #tpu.memory_space<vmem>>, vector<24x32xf32>
    tpu.vector_store %arg4[%c0_5, %c0_6], %4 {strides = array<i32>} : memref<24x32xf32, #tpu.memory_space<vmem>>, vector<24x32xf32>,
    return
  }
  func.func @transform_0(%arg0: i32) -> (i32, i32) {
    %c0_i32 = arith.constant 0 : i32
    %c0_i32_0 = arith.constant 0 : i32
    return %arg0, %c0_i32 : i32, i32
  }
  func.func @transform_1(%arg0: i32) -> (i32, i32) {
    %c0_i32 = arith.constant 0 : i32
    %c0_i32_0 = arith.constant 0 : i32
    %c0_i32_1 = arith.constant 0 : i32
    return %c0_i32, %c0_i32_0 : i32, i32
  }
  func.func @transform_2(%arg0: i32) -> (i32, i32) {
    %c0_i32 = arith.constant 0 : i32
    %c0_i32_0 = arith.constant 0 : i32
    return %arg0, %c0_i32 : i32, i32
  }
  func.func @transform_3(%arg0: i32) -> (i32, i32) {
    %c0_i32 = arith.constant 0 : i32
    %c0_i32_0 = arith.constant 0 : i32
    return %arg0, %c0_i32 : i32, i32
  }
}

</mosaic_0001>

<bundles_post_ra>
// kernel: tpu_custom_call.1
= control target key start
LH: loop header
LB: loop body
LE: loop exit
PB: predicated region body
PF: predicated region fallthrough
CT: control target
= control target key end

     0   :  { %s477_s12 = smov 0   ;;  %s526_s0 = inlined_call_operand.vmem [shape: f32[48,64], index: 0, kind: input, shape index: {}]   ;;  %s527_s1 = inlined_call_operand.vmem [shape: f32[64,32], index: 1, kind: input, shape index: {}]   ;;  %s528_s2 = inlined_call_operand.vmem [shape: f32[48,32], index: 2, kind: input, shape index: {}]   ;;  %s529_s3 = inlined_call_operand.vmem [shape: f32[48,32], index: 3, kind: output, shape index: {}]  }
   0x1 LB: > { %s372_s13 = sadd.s32 4294967295, %s453_s12   ;;  %p376_p0 = scmp.ge.s32.totalorder %s453_s12, 1  ;;  %s453_s12 = sphi %s477_s12, %s13_s12  }
   0x2   : > { %p149_p1 = scmp.lt.s32.totalorder %s453_s12, 3 }
   0x4   : > { %p150_p2 = pnand %p376_p0, %p149_p1 }
   0x5   : > { %s178_s16 = smul.u32 (!%p150_p2), 3, %s372_s13 }
   0x6   : > { %153 = sbr.rel (%p150_p2) target bundleno = 228 (0xe4), region = 32 }
   0x7   : > { %p179_p3 = scmp.lt.s32.totalorder (!%p150_p2), %s178_s16, 5 }
   0xb   : > { %v206_v0 = vld [vmem:[%s527_s1 + $0x38] sm:$0xff]  ;;  %v455_v1 = vmov 0.0   ;;  %v205_v2 = vld [vmem:[%s527_s1 + $0x30] sm:$0xff]  ;;  %v204_v3 = vld [vmem:[%s527_s1 + $0x28] sm:$0xff]  ;;  %s531_s16 = smov (!%p179_p3, %s178_s16), 5  ;;  %vm210_vm0 = vcmask 523264  }
   0xc   : > { %421 = vmatprep.subr.mxu1 %v455_v1  ;;  %396 = vmatprep.subr.mxu0 %v455_v1  ;;  %v203_v4 = vld [vmem:[%s527_s1 + $0x20] sm:$0xff]  ;;  %v202_v5 = vld [vmem:[%s527_s1 + $0x18] sm:$0xff]  ;;  %s500_s25 = sshll.u32 %s531_s16, 3  ;;  %v201_v6 = vld [vmem:[%s527_s1 + $0x10] sm:$0xff]  ;;  %vm456_vm1 = vmmov 0   ;;  %vm300_vm2 = vcmask 261120  }
   0xd   : > { %429 = vmatpush3.msra.mxu1 %v206_v0  ;;  %397 = vmatpush3.msra.mxu0 %v206_v0  ;;  %v200_v7 = vld [vmem:[%s527_s1 + $0x8] sm:$0xff]  ;;  %s182_s5 = scalar_lea.vmem %s526_s0, %s500_s25  ;;  %v199_v8 = vld [vmem:[%s527_s1] sm:$0xff]  ;;  %s188_s10 = scalar_lea.vmem %s528_s2, %s500_s25 }
   0xe   : > { %422 = vmatprep.subr.mxu1 %v455_v1  ;;  %398 = vmatprep.subr.mxu0 %v455_v1  ;;  %v197_v9 = vld [vmem:[%s182_s5 + $0x8] sm:$0xff]  ;;  %v196_v10 = vld [vmem:[%s182_s5] sm:$0xff]  ;;  %v198_v11 = vld [vmem:[%s182_s5 + $0x10] sm:$0xff]  ;;  %s194_s14 = scalar_lea.vmem %s529_s3, %s500_s25 }
   0xf   : > { %430 = vmatpush3.msra.mxu1 %v205_v2  ;;  %399 = vmatpush3.msra.mxu0 %v205_v2  ;;  %v208_v12 = vld [vmem:[%s188_s10 + $0x8] sm:$0xff]  ;;  %v207_v14 = vld [vmem:[%s188_s10] sm:$0xff]  ;;  %v209_v18 = vld [vmem:[%s188_s10 + $0x10] sm:$0xff] }
  0x10   : > { %423 = vmatprep.subr.mxu1 %v455_v1  ;;  %400 = vmatprep.subr.mxu0 %v455_v1 }
  0x11   : > { %431 = vmatpush3.msra.mxu1 %v204_v3  ;;  %401 = vmatpush3.msra.mxu0 %v204_v3 }
  0x12   : > { %424 = vmatprep.subr.mxu1 %v455_v1  ;;  %402 = vmatprep.subr.mxu0 %v455_v1 }
  0x13   : > { %432 = vmatpush3.msra.mxu1 %v203_v4  ;;  %403 = vmatpush3.msra.mxu0 %v203_v4 }
  0x14   : > { %425 = vmatprep.subr.mxu1 %v455_v1  ;;  %404 = vmatprep.subr.mxu0 %v455_v1 }
  0x15   : > { %433 = vmatpush3.msra.mxu1 %v202_v5  ;;  %405 = vmatpush3.msra.mxu0 %v202_v5 }
  0x16   : > { %426 = vmatprep.subr.mxu1 %v455_v1  ;;  %406 = vmatprep.subr.mxu0 %v455_v1 }
  0x17   : > { %434 = vmatpush3.msra.mxu1 %v201_v6  ;;  %407 = vmatpush3.msra.mxu0 %v201_v6 }
  0x18   : > { %427 = vmatprep.subr.mxu1 %v455_v1  ;;  %408 = vmatprep.subr.mxu0 %v455_v1 }
  0x19   : > { %435 = vmatpush3.msra.mxu1 %v200_v7  ;;  %409 = vmatpush3.msra.mxu0 %v200_v7 }
  0x1a   : > { %428 = vmatprep.subr.mxu1 %v455_v1  ;;  %415 = vmatprep.mubr.msk.f32.mxu1 %vm456_vm1, %v455_v1 }
  0x1b   : > { %436 = vmatpush3.msra.mxu1 %v199_v8  ;;  %410 = vmatprep.subr.mxu0 %v455_v1 }
  0x1c   : > { %416 = vmatmul.mubr.msk.f32.vlgmr.msra.gmra.mxu1 %vm210_vm0, %v197_v9  ;;  %411 = vmatpush3.msra.mxu0 %v199_v8 }
  0x1d   : > { %412 = vmatprep.mubr.msk.f32.mxu0 %vm456_vm1, %v455_v1  ;;  %418 = vmatprep.mubr.msk.f32.mxu1 %vm456_vm1, %v455_v1 }
  0x1e   : > { %413 = vmatmul.mubr.msk.f32.vlgmr.msra.gmra.mxu0 %vm210_vm0, %v196_v10 }
  0x20   : > { %419 = vmatmul.mubr.msk.f32.gmra.mxu1 %vm210_vm0, %v198_v11 }
  0xdc   : > { %v291_v13 = vpop.f32.mrf.mxu1 }
  0xdd   : > { %v292_v15 = vadd.f32 %v291_v13, %v208_v12 }
  0xde   : > { %v286_v16 = vpop.f32.mrf.mxu0  ;;  %v417_v17 = vpop.f32.mrf.mxu1 }
  0xdf   : > { %302 = vst.msk [vmem:[%s194_s14 + $0x8] sm:$0xff] %vm300_vm2, %v292_v15  ;;  %v287_v19 = vadd.f32 %v286_v16, %v207_v14 }
  0xe0   : > { %v414_v20 = vpop.f32.mrf.mxu0  ;;  %v296_v21 = vpop.f32.mrf.mxu1 }
  0xe1   : > { %301 = vst.msk [vmem:[%s194_s14] sm:$0xff] %vm300_vm2, %v287_v19  ;;  %v297_v22 = vadd.f32 %v296_v21, %v209_v18 }
  0xe2   : > { %v420_v23 = vpop.f32.mrf.mxu1 }
  0xe3   : > { %303 = vst.msk [vmem:[%s194_s14 + $0x10] sm:$0xff] %vm300_vm2, %v297_v22 }
  0xe4 PF: > { %s13_s12 = sadd.s32 1, %s453_s12  }
  0xe5   : > { %p10_p4 = scmp.ge.s32.totalorder %s13_s12, 4  }
  0xe7   :  { %12 = sbr.rel (!%p10_p4) target bundleno = 1 (0x1), region = 65 }

</bundles_post_ra>
